<compile_context>
chip_gen: v7x
topology: tpu7x:2x2x1
jax: 0.10.0
libtpu: 0.0.40
codegen_flags: <defaults>
</compile_context>

<pallas_src>
import jax
import jax.numpy as jnp
from jax.experimental import pallas as pl
from jax.experimental.pallas import tpu as pltpu


# ----------------------------------------------------------------------------
# Single fused kernel: one grid step == one batch element.
# ----------------------------------------------------------------------------
def _fused_attn_kernel(x_ref, g_ref, rup_ref,
                       wt_ref, wphi_ref, wpsi_ref, bpsi_ref,
                       y_ref, a_ref):
    # x_ref:   (1, Cin, N)  VMEM     g_ref:   (1, Cg, Ng)  VMEM
    # rup_ref: (Ng, N)      VMEM     wt_ref:  (Ci, Cin)    SMEM
    # wphi_ref:(Ci, Cg)     SMEM     wpsi_ref:(1, Ci)      SMEM
    # bpsi_ref:(1, 1)       SMEM
    # y_ref:   (1, Cin, N)  VMEM     a_ref:   (1, 1, N)    VMEM
    x = x_ref[0]            # (Cin, N) f32
    g = g_ref[0]            # (Cg, Ng) f32
    rup = rup_ref[...]      # (Ng, N)  f32

    Ci, Cin = wt_ref.shape
    Cg = wphi_ref.shape[1]

    # Single MXU push: bilinearly upsample ALL gating channels at once.
    # phi (1x1 conv, channel axis) and the resize (pixel axis) commute, so
    # phi(upsample(g)) == upsample(phi(g)) exactly.
    g_up = jnp.dot(g, rup, preferred_element_type=jnp.float32)          # (Cg, N)

    psi = None
    for o in range(Ci):
        # phi(g)_up row o  +  theta(x) row o: unrolled VPU broadcast-MACs
        # with scalar weights from SMEM (channel counts are tiny -> no MXU).
        acc = wphi_ref[o, 0] * g_up[0:1, :]
        for c in range(1, Cg):
            acc = acc + wphi_ref[o, c] * g_up[c:c + 1, :]
        for c in range(Cin):
            acc = acc + wt_ref[o, c] * x[c:c + 1, :]
        # f = relu(theta + phi_up); psi 1x1-conv contribution of this channel.
        f_o = jnp.maximum(acc, 0.0)
        contrib = wpsi_ref[0, o] * f_o
        psi = contrib if psi is None else psi + contrib
    psi = psi + bpsi_ref[0, 0]                                           # (1, N)

    # Softmax over all spatial positions of this batch element (lane reduce).
    m = jnp.max(psi, axis=-1, keepdims=True)
    e = jnp.exp(psi - m)
    denom = jnp.sum(e, axis=-1, keepdims=True)
    attn = e * pl.reciprocal(denom, approx=False)                        # (1, N)

    a_ref[0] = attn.astype(a_ref.dtype)
    y_ref[0] = (attn * x).astype(y_ref.dtype)     # broadcast over channels


# ----------------------------------------------------------------------------
# Wrapper: precompute the bilinear-upsample operator, one pallas_call.
# ----------------------------------------------------------------------------
def _axis_resize_matrix(dst, src, dtype=jnp.float32):
    """R (dst, src) s.t. R @ v reproduces jax.image.resize 'bilinear' along one
    axis (half-pixel centers == PyTorch align_corners=False)."""
    # TODO(synk): ancient torch F.upsample defaulted to align_corners=True; swap
    # the interpolation matrix if a reference checkpoint expects that behavior.
    eye = jnp.eye(src, dtype=dtype)
    return jax.image.resize(eye, (dst, src), method="bilinear")


def grid_attention_2d(x, g, params):
    w_theta, w_phi, w_psi, b_psi = (params["w_theta"], params["w_phi"],
                                    params["w_psi"], params["b_psi"])
    B, Cin, H, W = x.shape
    _, Cg, Hg, Wg = g.shape
    N, Ng = H * W, Hg * Wg

    # Separable bilinear upsample, flattened over pixels:
    #   up_flat = flat @ kron(R_h, R_w)^T
    r_h = _axis_resize_matrix(H, Hg)          # (H, Hg)
    r_w = _axis_resize_matrix(W, Wg)          # (W, Wg)
    rup = jnp.kron(r_h, r_w).T                # (Ng, N)

    x_flat = x.reshape(B, Cin, N)
    g_flat = g.reshape(B, Cg, Ng)

    smem = pl.BlockSpec(memory_space=pltpu.MemorySpace.SMEM)
    y, attn = pl.pallas_call(
        _fused_attn_kernel,
        out_shape=(jax.ShapeDtypeStruct((B, Cin, N), jnp.float32),
                   jax.ShapeDtypeStruct((B, 1, N), jnp.float32)),
        grid=(B,),
        in_specs=[pl.BlockSpec((1, Cin, N), lambda b: (b, 0, 0)),   # x
                  pl.BlockSpec((1, Cg, Ng), lambda b: (b, 0, 0)),   # g
                  pl.BlockSpec((Ng, N), lambda b: (0, 0)),          # upsample operator
                  smem, smem, smem, smem],                          # w_theta,w_phi,w_psi,b_psi
        out_specs=(pl.BlockSpec((1, Cin, N), lambda b: (b, 0, 0)),
                   pl.BlockSpec((1, 1, N), lambda b: (b, 0, 0))),
        compiler_params=pltpu.CompilerParams(
            dimension_semantics=("parallel",)),   # v7x: batch sharded over 2 TCs
    )(x_flat, g_flat, rup, w_theta, w_phi, w_psi, b_psi)

    # The second F.upsample(sigm_psi_f, input_size[2:]) is the identity here
    # (theta is a 1x1/stride-1 conv so theta_x spatial size == x spatial size),
    # and self.W is the identity (use_W=False).
    return y.reshape(B, Cin, H, W), attn.reshape(B, 1, H, W)


# ----------------------------------------------------------------------------
# Pure-JAX reference (same math, no Pallas) for a correctness check
# ----------------------------------------------------------------------------
def _reference(x, g, params):
    w_theta, w_phi, w_psi, b_psi = (params["w_theta"], params["w_phi"],
                                    params["w_psi"], params["b_psi"])
    B, Cin, H, W = x.shape
    Ci = w_theta.shape[0]
    theta_x = jnp.einsum("oc,bchw->bohw", w_theta, x)
    phi_g = jnp.einsum("oc,bchw->bohw", w_phi, g)
    phi_g = jax.image.resize(phi_g, (B, Ci, H, W), method="bilinear")
    f = jax.nn.relu(theta_x + phi_g)
    psi_f = jnp.einsum("oc,bchw->bohw", w_psi, f) + b_psi.reshape(1, 1, 1, 1)
    attn = jax.nn.softmax(psi_f.reshape(B, 1, -1), axis=2).reshape(B, 1, H, W)
    return attn * x, attn


if __name__ == "__main__":
    # Module hyper-params (small, consistent with the PyTorch __init__ defaults)
    in_channels, gating_channels = 4, 8
    inter_channels = max(in_channels // 2, 1)          # = 2

    key = jax.random.PRNGKey(0)
    k1, k2, k3, kx, kg = jax.random.split(key, 5)

    # Deterministic "kaiming"-style init (std = sqrt(2/fan_in)); psi bias = 10.0
    params = {
        "w_theta": jax.random.normal(k1, (inter_channels, in_channels), jnp.float32)
                   * (2.0 / in_channels) ** 0.5,
        "w_phi":   jax.random.normal(k2, (inter_channels, gating_channels), jnp.float32)
                   * (2.0 / gating_channels) ** 0.5,
        "w_psi":   jax.random.normal(k3, (1, inter_channels), jnp.float32)
                   * (2.0 / inter_channels) ** 0.5,
        "b_psi":   jnp.full((1, 1), 10.0, jnp.float32),
    }

    # x: (B, Cin, H, W) NCHW like PyTorch; g: coarser gating feature map
    x = jax.random.normal(kx, (2, in_channels, 16, 16), jnp.float32)
    g = jax.random.normal(kg, (2, gating_channels, 8, 8), jnp.float32)

    W_y, sigm = grid_attention_2d(x, g, params)
    jax.block_until_ready((W_y, sigm))

    W_y_ref, sigm_ref = _reference(x, g, params)
    assert W_y.shape == x.shape and sigm.shape == (2, 1, 16, 16)
    assert jnp.allclose(W_y, W_y_ref, rtol=1e-5, atol=1e-5)
    assert jnp.allclose(sigm, sigm_ref, rtol=1e-5, atol=1e-5)

    print("KERNEL_OK")
</pallas_src>

<mosaic_0001>
module attributes {stable_mosaic.version = 11 : i64} {
  func.func @_fused_attn_kernel(%arg0: i32, %arg1: memref<1x4x256xf32, #tpu.memory_space<vmem>>, %arg2: memref<1x8x64xf32, #tpu.memory_space<vmem>>, %arg3: memref<64x256xf32, #tpu.memory_space<vmem>>, %arg4: memref<2x4xf32, #tpu.memory_space<smem>>, %arg5: memref<2x8xf32, #tpu.memory_space<smem>>, %arg6: memref<1x2xf32, #tpu.memory_space<smem>>, %arg7: memref<1x1xf32, #tpu.memory_space<smem>>, %arg8: memref<1x4x256xf32, #tpu.memory_space<vmem>>, %arg9: memref<1x1x256xf32, #tpu.memory_space<vmem>>) attributes {dimension_semantics = [#tpu.dimension_semantics<parallel>], iteration_bounds = array<i64: 2>, scalar_prefetch = 0 : i64, scratch_operands = 0 : i64, tpu.core_type = #tpu.core_type<tc>, window_params = [{transform_indices = @transform_0, window_bounds = array<i64: 1, 4, 256>}, {transform_indices = @transform_1, window_bounds = array<i64: 1, 8, 64>}, {pipeline_mode = #tpu.pipeline_mode<synchronous>, transform_indices = @transform_2, window_bounds = array<i64: 64, 256>}, {transform_indices = @transform_3, window_bounds = array<i64: 2, 4>}, {transform_indices = @transform_4, window_bounds = array<i64: 2, 8>}, {transform_indices = @transform_5, window_bounds = array<i64: 1, 2>}, {transform_indices = @transform_6, window_bounds = array<i64: 1, 1>}, {transform_indices = @transform_7, window_bounds = array<i64: 1, 4, 256>}, {transform_indices = @transform_8, window_bounds = array<i64: 1, 1, 256>}]} {
    %c0 = arith.constant 0 : index
    %c0_0 = arith.constant 0 : index
    %c0_1 = arith.constant 0 : index
    %0 = vector.load %arg1[%c0, %c0_0, %c0_1] : memref<1x4x256xf32, #tpu.memory_space<vmem>>, vector<1x4x256xf32>
    %1 = vector.shape_cast %0 : vector<1x4x256xf32> to vector<4x256xf32>
    %c0_2 = arith.constant 0 : index
    %c0_3 = arith.constant 0 : index
    %c0_4 = arith.constant 0 : index
    %2 = vector.load %arg2[%c0_2, %c0_3, %c0_4] : memref<1x8x64xf32, #tpu.memory_space<vmem>>, vector<1x8x64xf32>
    %3 = vector.shape_cast %2 : vector<1x8x64xf32> to vector<8x64xf32>
    %c0_5 = arith.constant 0 : index
    %c0_6 = arith.constant 0 : index
    %4 = vector.load %arg3[%c0_5, %c0_6] : memref<64x256xf32, #tpu.memory_space<vmem>>, vector<64x256xf32>
    %cst = arith.constant dense<0.000000e+00> : vector<8x256xf32>
    %5 = tpu.matmul %3, %4, %cst {dimension_numbers = #tpu.dot_dimension_numbers<[1], [0], [0], [1], [0, 0, 1, 1], [], []>} : vector<8x64xf32>, vector<64x256xf32>, vector<8x256xf32> -> vector<8x256xf32>
    %c0_7 = arith.constant 0 : index
    %c0_8 = arith.constant 0 : index
    %6 = memref.load %arg5[%c0_7, %c0_8] : memref<2x8xf32, #tpu.memory_space<smem>>
    %7 = vector.extract_strided_slice %5 {offsets = [0, 0], sizes = [1, 256], strides = [1, 1]} : vector<8x256xf32> to vector<1x256xf32>
    %8 = vector.broadcast %6 : f32 to vector<1x256xf32>
    %9 = arith.mulf %8, %7 : vector<1x256xf32>
    %c0_9 = arith.constant 0 : index
    %c1 = arith.constant 1 : index
    %10 = memref.load %arg5[%c0_9, %c1] : memref<2x8xf32, #tpu.memory_space<smem>>
    %11 = vector.extract_strided_slice %5 {offsets = [1, 0], sizes = [1, 256], strides = [1, 1]} : vector<8x256xf32> to vector<1x256xf32>
    %12 = vector.broadcast %10 : f32 to vector<1x256xf32>
    %13 = arith.mulf %12, %11 : vector<1x256xf32>
    %14 = arith.addf %9, %13 : vector<1x256xf32>
    %c0_10 = arith.constant 0 : index
    %c2 = arith.constant 2 : index
    %15 = memref.load %arg5[%c0_10, %c2] : memref<2x8xf32, #tpu.memory_space<smem>>
    %16 = vector.extract_strided_slice %5 {offsets = [2, 0], sizes = [1, 256], strides = [1, 1]} : vector<8x256xf32> to vector<1x256xf32>
    %17 = vector.broadcast %15 : f32 to vector<1x256xf32>
    %18 = arith.mulf %17, %16 : vector<1x256xf32>
    %19 = arith.addf %14, %18 : vector<1x256xf32>
    %c0_11 = arith.constant 0 : index
    %c3 = arith.constant 3 : index
    %20 = memref.load %arg5[%c0_11, %c3] : memref<2x8xf32, #tpu.memory_space<smem>>
    %21 = vector.extract_strided_slice %5 {offsets = [3, 0], sizes = [1, 256], strides = [1, 1]} : vector<8x256xf32> to vector<1x256xf32>
    %22 = vector.broadcast %20 : f32 to vector<1x256xf32>
    %23 = arith.mulf %22, %21 : vector<1x256xf32>
    %24 = arith.addf %19, %23 : vector<1x256xf32>
    %c0_12 = arith.constant 0 : index
    %c4 = arith.constant 4 : index
    %25 = memref.load %arg5[%c0_12, %c4] : memref<2x8xf32, #tpu.memory_space<smem>>
    %26 = vector.extract_strided_slice %5 {offsets = [4, 0], sizes = [1, 256], strides = [1, 1]} : vector<8x256xf32> to vector<1x256xf32>
    %27 = vector.broadcast %25 : f32 to vector<1x256xf32>
    %28 = arith.mulf %27, %26 : vector<1x256xf32>
    %29 = arith.addf %24, %28 : vector<1x256xf32>
    %c0_13 = arith.constant 0 : index
    %c5 = arith.constant 5 : index
    %30 = memref.load %arg5[%c0_13, %c5] : memref<2x8xf32, #tpu.memory_space<smem>>
    %31 = vector.extract_strided_slice %5 {offsets = [5, 0], sizes = [1, 256], strides = [1, 1]} : vector<8x256xf32> to vector<1x256xf32>
    %32 = vector.broadcast %30 : f32 to vector<1x256xf32>
    %33 = arith.mulf %32, %31 : vector<1x256xf32>
    %34 = arith.addf %29, %33 : vector<1x256xf32>
    %c0_14 = arith.constant 0 : index
    %c6 = arith.constant 6 : index
    %35 = memref.load %arg5[%c0_14, %c6] : memref<2x8xf32, #tpu.memory_space<smem>>
    %36 = vector.extract_strided_slice %5 {offsets = [6, 0], sizes = [1, 256], strides = [1, 1]} : vector<8x256xf32> to vector<1x256xf32>
    %37 = vector.broadcast %35 : f32 to vector<1x256xf32>
    %38 = arith.mulf %37, %36 : vector<1x256xf32>
    %39 = arith.addf %34, %38 : vector<1x256xf32>
    %c0_15 = arith.constant 0 : index
    %c7 = arith.constant 7 : index
    %40 = memref.load %arg5[%c0_15, %c7] : memref<2x8xf32, #tpu.memory_space<smem>>
    %41 = vector.extract_strided_slice %5 {offsets = [7, 0], sizes = [1, 256], strides = [1, 1]} : vector<8x256xf32> to vector<1x256xf32>
    %42 = vector.broadcast %40 : f32 to vector<1x256xf32>
    %43 = arith.mulf %42, %41 : vector<1x256xf32>
    %44 = arith.addf %39, %43 : vector<1x256xf32>
    %c0_16 = arith.constant 0 : index
    %c0_17 = arith.constant 0 : index
    %45 = memref.load %arg4[%c0_16, %c0_17] : memref<2x4xf32, #tpu.memory_space<smem>>
    %46 = vector.extract_strided_slice %1 {offsets = [0, 0], sizes = [1, 256], strides = [1, 1]} : vector<4x256xf32> to vector<1x256xf32>
    %47 = vector.broadcast %45 : f32 to vector<1x256xf32>
    %48 = arith.mulf %47, %46 : vector<1x256xf32>
    %49 = arith.addf %44, %48 : vector<1x256xf32>
    %c0_18 = arith.constant 0 : index
    %c1_19 = arith.constant 1 : index
    %50 = memref.load %arg4[%c0_18, %c1_19] : memref<2x4xf32, #tpu.memory_space<smem>>
    %51 = vector.extract_strided_slice %1 {offsets = [1, 0], sizes = [1, 256], strides = [1, 1]} : vector<4x256xf32> to vector<1x256xf32>
    %52 = vector.broadcast %50 : f32 to vector<1x256xf32>
    %53 = arith.mulf %52, %51 : vector<1x256xf32>
    %54 = arith.addf %49, %53 : vector<1x256xf32>
    %c0_20 = arith.constant 0 : index
    %c2_21 = arith.constant 2 : index
    %55 = memref.load %arg4[%c0_20, %c2_21] : memref<2x4xf32, #tpu.memory_space<smem>>
    %56 = vector.extract_strided_slice %1 {offsets = [2, 0], sizes = [1, 256], strides = [1, 1]} : vector<4x256xf32> to vector<1x256xf32>
    %57 = vector.broadcast %55 : f32 to vector<1x256xf32>
    %58 = arith.mulf %57, %56 : vector<1x256xf32>
    %59 = arith.addf %54, %58 : vector<1x256xf32>
    %c0_22 = arith.constant 0 : index
    %c3_23 = arith.constant 3 : index
    %60 = memref.load %arg4[%c0_22, %c3_23] : memref<2x4xf32, #tpu.memory_space<smem>>
    %61 = vector.extract_strided_slice %1 {offsets = [3, 0], sizes = [1, 256], strides = [1, 1]} : vector<4x256xf32> to vector<1x256xf32>
    %62 = vector.broadcast %60 : f32 to vector<1x256xf32>
    %63 = arith.mulf %62, %61 : vector<1x256xf32>
    %64 = arith.addf %59, %63 : vector<1x256xf32>
    %cst_24 = arith.constant 0.000000e+00 : f32
    %65 = vector.broadcast %cst_24 : f32 to vector<1x256xf32>
    %66 = arith.maximumf %64, %65 : vector<1x256xf32>
    %c0_25 = arith.constant 0 : index
    %c0_26 = arith.constant 0 : index
    %67 = memref.load %arg6[%c0_25, %c0_26] : memref<1x2xf32, #tpu.memory_space<smem>>
    %68 = vector.broadcast %67 : f32 to vector<1x256xf32>
    %69 = arith.mulf %68, %66 : vector<1x256xf32>
    %c1_27 = arith.constant 1 : index
    %c0_28 = arith.constant 0 : index
    %70 = memref.load %arg5[%c1_27, %c0_28] : memref<2x8xf32, #tpu.memory_space<smem>>
    %71 = vector.extract_strided_slice %5 {offsets = [0, 0], sizes = [1, 256], strides = [1, 1]} : vector<8x256xf32> to vector<1x256xf32>
    %72 = vector.broadcast %70 : f32 to vector<1x256xf32>
    %73 = arith.mulf %72, %71 : vector<1x256xf32>
    %c1_29 = arith.constant 1 : index
    %c1_30 = arith.constant 1 : index
    %74 = memref.load %arg5[%c1_29, %c1_30] : memref<2x8xf32, #tpu.memory_space<smem>>
    %75 = vector.extract_strided_slice %5 {offsets = [1, 0], sizes = [1, 256], strides = [1, 1]} : vector<8x256xf32> to vector<1x256xf32>
    %76 = vector.broadcast %74 : f32 to vector<1x256xf32>
    %77 = arith.mulf %76, %75 : vector<1x256xf32>
    %78 = arith.addf %73, %77 : vector<1x256xf32>
    %c1_31 = arith.constant 1 : index
    %c2_32 = arith.constant 2 : index
    %79 = memref.load %arg5[%c1_31, %c2_32] : memref<2x8xf32, #tpu.memory_space<smem>>
    %80 = vector.extract_strided_slice %5 {offsets = [2, 0], sizes = [1, 256], strides = [1, 1]} : vector<8x256xf32> to vector<1x256xf32>
    %81 = vector.broadcast %79 : f32 to vector<1x256xf32>
    %82 = arith.mulf %81, %80 : vector<1x256xf32>
    %83 = arith.addf %78, %82 : vector<1x256xf32>
    %c1_33 = arith.constant 1 : index
    %c3_34 = arith.constant 3 : index
    %84 = memref.load %arg5[%c1_33, %c3_34] : memref<2x8xf32, #tpu.memory_space<smem>>
    %85 = vector.extract_strided_slice %5 {offsets = [3, 0], sizes = [1, 256], strides = [1, 1]} : vector<8x256xf32> to vector<1x256xf32>
    %86 = vector.broadcast %84 : f32 to vector<1x256xf32>
    %87 = arith.mulf %86, %85 : vector<1x256xf32>
    %88 = arith.addf %83, %87 : vector<1x256xf32>
    %c1_35 = arith.constant 1 : index
    %c4_36 = arith.constant 4 : index
    %89 = memref.load %arg5[%c1_35, %c4_36] : memref<2x8xf32, #tpu.memory_space<smem>>
    %90 = vector.extract_strided_slice %5 {offsets = [4, 0], sizes = [1, 256], strides = [1, 1]} : vector<8x256xf32> to vector<1x256xf32>
    %91 = vector.broadcast %89 : f32 to vector<1x256xf32>
    %92 = arith.mulf %91, %90 : vector<1x256xf32>
    %93 = arith.addf %88, %92 : vector<1x256xf32>
    %c1_37 = arith.constant 1 : index
    %c5_38 = arith.constant 5 : index
    %94 = memref.load %arg5[%c1_37, %c5_38] : memref<2x8xf32, #tpu.memory_space<smem>>
    %95 = vector.extract_strided_slice %5 {offsets = [5, 0], sizes = [1, 256], strides = [1, 1]} : vector<8x256xf32> to vector<1x256xf32>
    %96 = vector.broadcast %94 : f32 to vector<1x256xf32>
    %97 = arith.mulf %96, %95 : vector<1x256xf32>
    %98 = arith.addf %93, %97 : vector<1x256xf32>
    %c1_39 = arith.constant 1 : index
    %c6_40 = arith.constant 6 : index
    %99 = memref.load %arg5[%c1_39, %c6_40] : memref<2x8xf32, #tpu.memory_space<smem>>
    %100 = vector.extract_strided_slice %5 {offsets = [6, 0], sizes = [1, 256], strides = [1, 1]} : vector<8x256xf32> to vector<1x256xf32>
    %101 = vector.broadcast %99 : f32 to vector<1x256xf32>
    %102 = arith.mulf %101, %100 : vector<1x256xf32>
    %103 = arith.addf %98, %102 : vector<1x256xf32>
    %c1_41 = arith.constant 1 : index
    %c7_42 = arith.constant 7 : index
    %104 = memref.load %arg5[%c1_41, %c7_42] : memref<2x8xf32, #tpu.memory_space<smem>>
    %105 = vector.extract_strided_slice %5 {offsets = [7, 0], sizes = [1, 256], strides = [1, 1]} : vector<8x256xf32> to vector<1x256xf32>
    %106 = vector.broadcast %104 : f32 to vector<1x256xf32>
    %107 = arith.mulf %106, %105 : vector<1x256xf32>
    %108 = arith.addf %103, %107 : vector<1x256xf32>
    %c1_43 = arith.constant 1 : index
    %c0_44 = arith.constant 0 : index
    %109 = memref.load %arg4[%c1_43, %c0_44] : memref<2x4xf32, #tpu.memory_space<smem>>
    %110 = vector.extract_strided_slice %1 {offsets = [0, 0], sizes = [1, 256], strides = [1, 1]} : vector<4x256xf32> to vector<1x256xf32>
    %111 = vector.broadcast %109 : f32 to vector<1x256xf32>
    %112 = arith.mulf %111, %110 : vector<1x256xf32>
    %113 = arith.addf %108, %112 : vector<1x256xf32>
    %c1_45 = arith.constant 1 : index
    %c1_46 = arith.constant 1 : index
    %114 = memref.load %arg4[%c1_45, %c1_46] : memref<2x4xf32, #tpu.memory_space<smem>>
    %115 = vector.extract_strided_slice %1 {offsets = [1, 0], sizes = [1, 256], strides = [1, 1]} : vector<4x256xf32> to vector<1x256xf32>
    %116 = vector.broadcast %114 : f32 to vector<1x256xf32>
    %117 = arith.mulf %116, %115 : vector<1x256xf32>
    %118 = arith.addf %113, %117 : vector<1x256xf32>
    %c1_47 = arith.constant 1 : index
    %c2_48 = arith.constant 2 : index
    %119 = memref.load %arg4[%c1_47, %c2_48] : memref<2x4xf32, #tpu.memory_space<smem>>
    %120 = vector.extract_strided_slice %1 {offsets = [2, 0], sizes = [1, 256], strides = [1, 1]} : vector<4x256xf32> to vector<1x256xf32>
    %121 = vector.broadcast %119 : f32 to vector<1x256xf32>
    %122 = arith.mulf %121, %120 : vector<1x256xf32>
    %123 = arith.addf %118, %122 : vector<1x256xf32>
    %c1_49 = arith.constant 1 : index
    %c3_50 = arith.constant 3 : index
    %124 = memref.load %arg4[%c1_49, %c3_50] : memref<2x4xf32, #tpu.memory_space<smem>>
    %125 = vector.extract_strided_slice %1 {offsets = [3, 0], sizes = [1, 256], strides = [1, 1]} : vector<4x256xf32> to vector<1x256xf32>
    %126 = vector.broadcast %124 : f32 to vector<1x256xf32>
    %127 = arith.mulf %126, %125 : vector<1x256xf32>
    %128 = arith.addf %123, %127 : vector<1x256xf32>
    %cst_51 = arith.constant 0.000000e+00 : f32
    %129 = vector.broadcast %cst_51 : f32 to vector<1x256xf32>
    %130 = arith.maximumf %128, %129 : vector<1x256xf32>
    %c0_52 = arith.constant 0 : index
    %c1_53 = arith.constant 1 : index
    %131 = memref.load %arg6[%c0_52, %c1_53] : memref<1x2xf32, #tpu.memory_space<smem>>
    %132 = vector.broadcast %131 : f32 to vector<1x256xf32>
    %133 = arith.mulf %132, %130 : vector<1x256xf32>
    %134 = arith.addf %69, %133 : vector<1x256xf32>
    %c0_54 = arith.constant 0 : index
    %c0_55 = arith.constant 0 : index
    %135 = memref.load %arg7[%c0_54, %c0_55] : memref<1x1xf32, #tpu.memory_space<smem>>
    %136 = vector.broadcast %135 : f32 to vector<1x256xf32>
    %137 = arith.addf %134, %136 : vector<1x256xf32>
    %cst_56 = arith.constant dense<0xFF800000> : vector<1xf32>
    %138 = vector.multi_reduction <maximumf>, %137, %cst_56 [1] : vector<1x256xf32> to vector<1xf32>
    %139 = vector.shape_cast %138 : vector<1xf32> to vector<1x1xf32>
    %140 = vector.broadcast %139 : vector<1x1xf32> to vector<1x256xf32>
    %141 = arith.subf %137, %140 : vector<1x256xf32>
    %142 = math.exp %141 : vector<1x256xf32>
    %cst_57 = arith.constant dense<0.000000e+00> : vector<1xf32>
    %143 = vector.multi_reduction <add>, %142, %cst_57 [1] : vector<1x256xf32> to vector<1xf32>
    %144 = vector.shape_cast %143 : vector<1xf32> to vector<1x1xf32>
    %145 = tpu.reciprocal %144 : vector<1x1xf32> -> vector<1x1xf32>
    %146 = vector.broadcast %145 : vector<1x1xf32> to vector<1x256xf32>
    %147 = arith.mulf %142, %146 : vector<1x256xf32>
    %c0_58 = arith.constant 0 : index
    %c0_59 = arith.constant 0 : index
    %c0_60 = arith.constant 0 : index
    %148 = vector.load %arg9[%c0_58, %c0_59, %c0_60] : memref<1x1x256xf32, #tpu.memory_space<vmem>>, vector<1x1x256xf32>
    %149 = vector.shape_cast %148 : vector<1x1x256xf32> to vector<1x256xf32>
    %150 = vector.shape_cast %147 : vector<1x256xf32> to vector<1x1x256xf32>
    tpu.vector_store %arg9[%c0_58, %c0_59, %c0_60], %150 {strides = array<i32>} : memref<1x1x256xf32, #tpu.memory_space<vmem>>, vector<1x1x256xf32>,
    %151 = vector.broadcast %147 : vector<1x256xf32> to vector<4x256xf32>
    %152 = arith.mulf %151, %1 : vector<4x256xf32>
    %c0_61 = arith.constant 0 : index
    %c0_62 = arith.constant 0 : index
    %c0_63 = arith.constant 0 : index
    %153 = vector.load %arg8[%c0_61, %c0_62, %c0_63] : memref<1x4x256xf32, #tpu.memory_space<vmem>>, vector<1x4x256xf32>
    %154 = vector.shape_cast %153 : vector<1x4x256xf32> to vector<4x256xf32>
    %155 = vector.shape_cast %152 : vector<4x256xf32> to vector<1x4x256xf32>
    tpu.vector_store %arg8[%c0_61, %c0_62, %c0_63], %155 {strides = array<i32>} : memref<1x4x256xf32, #tpu.memory_space<vmem>>, vector<1x4x256xf32>,
    return
  }
  func.func @transform_0(%arg0: i32) -> (i32, i32, i32) {
    %c0_i32 = arith.constant 0 : i32
    %c0_i32_0 = arith.constant 0 : i32
    %c0_i32_1 = arith.constant 0 : i32
    return %arg0, %c0_i32, %c0_i32_0 : i32, i32, i32
  }
  func.func @transform_1(%arg0: i32) -> (i32, i32, i32) {
    %c0_i32 = arith.constant 0 : i32
    %c0_i32_0 = arith.constant 0 : i32
    %c0_i32_1 = arith.constant 0 : i32
    return %arg0, %c0_i32, %c0_i32_0 : i32, i32, i32
  }
  func.func @transform_2(%arg0: i32) -> (i32, i32) {
    %c0_i32 = arith.constant 0 : i32
    %c0_i32_0 = arith.constant 0 : i32
    %c0_i32_1 = arith.constant 0 : i32
    return %c0_i32, %c0_i32_0 : i32, i32
  }
  func.func @transform_3(%arg0: i32) -> (i32, i32) {
    %c0_i32 = arith.constant 0 : i32
    %c0_i32_0 = arith.constant 0 : i32
    %c0_i32_1 = arith.constant 0 : i32
    return %c0_i32, %c0_i32_0 : i32, i32
  }
  func.func @transform_4(%arg0: i32) -> (i32, i32) {
    %c0_i32 = arith.constant 0 : i32
    %c0_i32_0 = arith.constant 0 : i32
    %c0_i32_1 = arith.constant 0 : i32
    return %c0_i32, %c0_i32_0 : i32, i32
  }
  func.func @transform_5(%arg0: i32) -> (i32, i32) {
    %c0_i32 = arith.constant 0 : i32
    %c0_i32_0 = arith.constant 0 : i32
    %c0_i32_1 = arith.constant 0 : i32
    return %c0_i32, %c0_i32_0 : i32, i32
  }
  func.func @transform_6(%arg0: i32) -> (i32, i32) {
    %c0_i32 = arith.constant 0 : i32
    %c0_i32_0 = arith.constant 0 : i32
    %c0_i32_1 = arith.constant 0 : i32
    return %c0_i32, %c0_i32_0 : i32, i32
  }
  func.func @transform_7(%arg0: i32) -> (i32, i32, i32) {
    %c0_i32 = arith.constant 0 : i32
    %c0_i32_0 = arith.constant 0 : i32
    %c0_i32_1 = arith.constant 0 : i32
    return %arg0, %c0_i32, %c0_i32_0 : i32, i32, i32
  }
  func.func @transform_8(%arg0: i32) -> (i32, i32, i32) {
    %c0_i32 = arith.constant 0 : i32
    %c0_i32_0 = arith.constant 0 : i32
    %c0_i32_1 = arith.constant 0 : i32
    return %arg0, %c0_i32, %c0_i32_0 : i32, i32, i32
  }
}

</mosaic_0001>

<bundles_post_ra>
// kernel: tpu_custom_call.1
= control target key start
LH: loop header
LB: loop body
LE: loop exit
PB: predicated region body
PF: predicated region fallthrough
CT: control target
= control target key end

     0   :  { %s2162_s0 = inlined_call_operand.hbm [shape: f32[2,4,256], index: 0, kind: input, shape index: {}]   ;;  %s2163_s1 = inlined_call_operand.hbm [shape: f32[2,8,64], index: 1, kind: input, shape index: {}]   ;;  %s2164_s2 = inlined_call_operand.hbm [shape: f32[64,256], index: 2, kind: input, shape index: {}]   ;;  %s2165_s3 = inlined_call_operand.vmem [shape: f32[2,4], index: 3, kind: input, shape index: {}]   ;;  %s2166_s4 = inlined_call_operand.vmem [shape: f32[2,8], index: 4, kind: input, shape index: {}]   ;;  %s2167_s5 = inlined_call_operand.vmem [shape: f32[1,2], index: 5, kind: input, shape index: {}]   ;;  %s2168_s6 = inlined_call_operand.<no memory space> [shape: f32[1,1], index: 6, kind: input, shape index: {}]   ;;  %s2169_s7 = inlined_call_operand.hbm [shape: f32[2,4,256], index: 7, kind: output, shape index: {0}]   ;;  %s2170_s8 = inlined_call_operand.hbm [shape: f32[2,1,256], index: 8, kind: output, shape index: {1}]  }
   0x1   :  { %2179 = sst [smem:[#allocation28_spill]] %s2162_s0 }
   0x2   :  { %2180 = sst [smem:[#allocation29_spill]] %s2163_s1 }
   0x3   :  { %2181 = sst [smem:[#allocation30_spill]] %s2164_s2 }
   0x4   :  { %2182 = sst [smem:[#allocation31_spill]] %s2165_s3 }
   0x5   :  { %2183 = sst [smem:[#allocation32_spill]] %s2166_s4 }
   0x6   :  { %2184 = sst [smem:[#allocation33_spill]] %s2167_s5 }
   0x7   :  { %14 = sst [smem:[#allocation2]] %s2168_s6 }
   0x8   :  { %15 = vsyncpa [#allocation4], 0 }
   0x9   :  { %17 = vsyncpa [#allocation4 + $0x1], 0 }
   0xa   :  { %18 = vsyncpa [#allocation8], 0 }
   0xb   :  { %20 = vsyncpa [#allocation8 + $0x1], 0 }
   0xc   :  { %21 = vsyncpa [#allocation6], 0 }
   0xd   :  { %22 = vsyncpa [#allocation12], 0 }
   0xe   :  { %23 = vsyncpa [#allocation5], 0 }
   0xf   :  { %25 = vsyncpa [#allocation5 + $0x1], 0 }
  0x10   :  { %26 = vsyncpa [#allocation16], 0 }
  0x11   :  { %28 = vsyncpa [#allocation16 + $0x1], 0  ;;  %s1588_s29 = smov 0   ;;  %s1590_s30 = smov 0  }
  0x12   :  { %s1592_s9 = smov 0   ;;  %s1594_s10 = smov 0  }
  0x13 LB: > { %2185 = sst [smem:[#allocation24_spill]] %s1518_s30  ;;  %s1528_s6 = smov [#allocation9]   ;;  %s1526_s10 = sphi %s1594_s10, %s2215_s10   ;;  %s1522_s9 = sphi %s1592_s9, %s2218_s9   ;;  %s1518_s30 = sphi %s1590_s30, %s2217_s30   ;;  %s1514_s29 = sphi %s1588_s29, %s2216_s29  }
  0x14   : > { %2186 = sst [smem:[#allocation25_spill]] %s1522_s9  ;;  %s260_s11 = sshll.u32 %s1528_s6, 4  ;;  %s1614_s11 = int_to_ptr.vmem [resolvable:$true] %s260_s11 }
  0x15   : > { %s1609_s12 = sadd.s32 4294967295, %s1526_s10   ;;  %p1100_p0 = scmp.ge.s32.totalorder %s1526_s10, 1 }
  0x16   : > { %p2171_p1 = scmp.eq.s32.totalorder %s1609_s12, 0  ;;  %p248_p2 = scmp.lt.s32.totalorder %s1526_s10, 3 }
  0x17   : > { %s2188_s4 = sld [smem:[#allocation32_spill]]  ;;  %s2190_s3 = sld [smem:[#allocation31_spill]] }
  0x18   : > { %p1616_p3 = pnand %p1100_p0, %p248_p2  ;;  %s2191_s5 = sld [smem:[#allocation33_spill]] }
  0x19   : > { %s2192_s2 = sld [smem:[#allocation30_spill]] }
  0x1a   : > { %s2187_s13 = scalar_select %p1616_p3, 1, 0 }
  0x1b   : > { %p1195_p5 = pneg %p1616_p3 }
  0x1d   : > { %s285_s16 = sshll.u32 %s2188_s4, 4  ;;  %p1630_p6 = pnand %p1195_p5, %p2171_p1  ;;  %s1626_s16 = int_to_ptr.vmem [resolvable:$true] %s285_s16 }
  0x1e   : > { %s274_s20 = sshll.u32 %s2190_s3, 4  ;;  %s296_s23 = sshll.u32 %s2191_s5, 4  ;;  %s1637_s20 = int_to_ptr.vmem [resolvable:$true] %s274_s20  ;;  %s297_s23 = int_to_ptr.vmem [resolvable:$true] %s296_s23 }
  0x1f   : > { %s1279_s26 = scalar_lea.hbm %s2192_s2, 2048  ;;  %p1650_p8 = pneg %p1630_p6 }
  0x20   : > { %p1280_p7 = scmp.ne.s32.totalorder %s2192_s2, %s1279_s26  ;;  %p1286_p11 = scmp.lt.u32.totalorder %s1279_s26, %s2192_s2 }
  0x22   : > { %p1282_p9 = pnand %p1650_p8, %p1280_p7 }
  0x24   : > { %p1283_p10 = pneg %p1282_p9 }
  0x26   : > { %p1288_p12 = pnand %p1286_p11, %p1283_p10 }
  0x28   : > { %1291 = shalt.err (!%p1288_p12)
}
  0x29   : > { %s1292_s18 = scalar_lea.vmem %s1614_s11, 2048  ;;  %p1300_p5 = scmp.lt.s32.totalorder %s1614_s11, %s1614_s11 }
  0x2a   : > { %p1293_p13 = scmp.ne.s32.totalorder %s1614_s11, %s1292_s18  ;;  %p1301_p4 = scmp.lt.s32.totalorder %s1292_s18, %s1292_s18 }
  0x2c   : > { %p1295_p0 = pnand %p1293_p13, %p1650_p8  ;;  %p1302_p7 = por %p1301_p4, %p1300_p5 }
  0x2e   : > { %p1296_p2 = pneg %p1295_p0 }
  0x30   : > { %p1303_p9 = pnand %p1302_p7, %p1296_p2 }
  0x32   : > { %1306 = shalt.err (!%p1303_p9)
}
  0x33   : > { %s1529_s19 = smov 256   ;;  %s1530_s21 = smov 16  }
  0x34   : > { %1198 = dma.hbm_to_vmem [thread:$0]  (!%p1630_p6), %s2192_s2, 2048, %s1614_s11, [#allocation8], %s1529_s19, %s1529_s19, %s1530_s21  }
  0x35   : > { %s1307_s25 = scalar_lea.vmem %s1626_s16, 32  ;;  %p1315_p12 = scmp.lt.s32.totalorder %s1626_s16, %s1626_s16 }
  0x36   : > { %p1308_p10 = scmp.ne.s32.totalorder %s1626_s16, %s1307_s25  ;;  %p1316_p13 = scmp.lt.s32.totalorder %s1307_s25, %s1307_s25 }
  0x38   : > { %p1310_p11 = pnand %p1308_p10, %p1650_p8  ;;  %p1317_p0 = por %p1316_p13, %p1315_p12 }
  0x3a   : > { %p1311_p4 = pneg %p1310_p11 }
  0x3c   : > { %p1318_p2 = pnand %p1317_p0, %p1311_p4 }
  0x3e   : > { %1321 = shalt.err (!%p1318_p2)
}
  0x3f   : > { %s1531_s26 = smov [#allocation11]   ;;  %s1322_s11 = scalar_lea.vmem %s1637_s20, 32 }
  0x40   : > { %1204 = dma.vmem_to_smem (!%p1630_p6), %s1626_s16, 32, %s1531_s26, [#allocation12]  }
  0x41   : > { %p1323_p5 = scmp.ne.s32.totalorder %s1637_s20, %s1322_s11  ;;  %p1330_p10 = scmp.lt.s32.totalorder %s1637_s20, %s1637_s20 }
  0x42   : > { %p1331_p11 = scmp.lt.s32.totalorder %s1322_s11, %s1322_s11 }
  0x43   : > { %p1325_p7 = pnand %p1323_p5, %p1650_p8 }
  0x44   : > { %p1332_p12 = por %p1331_p11, %p1330_p10 }
  0x45   : > { %p1326_p9 = pneg %p1325_p7 }
  0x47   : > { %p1333_p4 = pnand %p1332_p12, %p1326_p9 }
  0x49   : > { %1336 = shalt.err (!%p1333_p4)
}
  0x4a   : > { %s1532_s27 = smov [#allocation10]   ;;  %s1337_s16 = scalar_lea.vmem %s297_s23, 16 }
  0x4b   : > { %1201 = dma.vmem_to_smem (!%p1630_p6), %s1637_s20, 32, %s1532_s27, [#allocation6]  }
  0x4c   : > { %p1338_p13 = scmp.ne.s32.totalorder %s297_s23, %s1337_s16  ;;  %p1345_p5 = scmp.lt.s32.totalorder %s297_s23, %s297_s23 }
  0x4d   : > { %p1346_p7 = scmp.lt.s32.totalorder %s1337_s16, %s1337_s16 }
  0x4e   : > { %p1340_p0 = pnand %p1338_p13, %p1650_p8 }
  0x4f   : > { %p1347_p9 = por %p1346_p7, %p1345_p5 }
  0x50   : > { %p1341_p2 = pneg %p1340_p0 }
  0x52   : > { %p1348_p10 = pnand %p1347_p9, %p1341_p2 }
  0x54   : > { %1351 = shalt.err (!%p1348_p10)
}
  0x55   : > { %s1533_s15 = smov [#allocation13]   ;;  %s1099_s20 = sadd.s32 4294967294, %s1526_s10  }
  0x56   : > { %1207 = dma.vmem_to_smem (!%p1630_p6), %s297_s23, 16, %s1533_s15, [#allocation12]  }
  0x57   : > { %s1699_s6 = sadd.s32 1, %s1526_s10   ;;  %s41_s18 = sadd.s32 1, %s1522_s9 }
  0x58   : > { %2194 = sst [smem:[#allocation26_spill]] %s1699_s6  ;;  %s38_s17 = ssub.s32 %s1526_s10, %s1699_s6 }
  0x59   : > { %p39_p8 = scmp.eq.s32.totalorder %s38_s17, 0  ;;  %p48_p11 = scmp.ne.s32.totalorder %s1522_s9, %s1518_s30 }
  0x5a   : > { %p49_p12 = scmp.eq.s32.totalorder %s1526_s10, 0  ;;  %p54_p4 = scmp.ne.s32.totalorder %s1518_s30, %s1514_s29 }
  0x5b   : > { %s1710_s19 = scalar_select %p39_p8, %s1522_s9, %s41_s18  }
  0x5c   : > { %p1712_p13 = por %p49_p12, %p48_p11  ;;  %p1718_p6 = por %p2171_p1, %p54_p4 }
  0x5d   : > { %2195 = sst [smem:[#allocation27_spill]] %s1710_s19  ;;  %p209_p0 = scmp.eq.s32.totalorder %s1609_s12, 1 }
  0x5e   : > { %s2197_s23 = scalar_select %p1718_p6, 1, 0 }
  0x5f   : > { %p215_p2 = scmp.eq.s32.totalorder %s1099_s20, 1  ;;  %p1226_p5 = scmp.lt.s32.totalorder %s1526_s10, 2 }
  0x60   : > { %s310_s22 = sand.u32 1, %s1522_s9   ;;  %p1725_p7 = por %p209_p0, %p48_p11 }
  0x61   : > { %p1729_p9 = por %p215_p2, %p54_p4  ;;  %s1733_s26 = sshll.u32 %s310_s22, 3 }
  0x62   : > { %s2198_s24 = scalar_select %p1725_p7, 1, 0 }
  0x63   : > { %s2199_s25 = scalar_select %p1729_p9, 1, 0 }
  0x64   : > { %s1152_s11 = sshll.u32 %s1526_s10, 7  ;;  %s2200_s0 = sld [smem:[#allocation28_spill]] }
  0x65   : > { %s314_s16 = scalar_lea.vmem [#allocation3], %s1733_s26  ;;  %p1746_p10 = pnand %p1226_p5, %p1712_p13 }
  0x66   : > { %s322_s15 = sshll.u32 %s314_s16, 4  ;;  %s2202_s1 = sld [smem:[#allocation29_spill]]  ;;  %s1742_s15 = int_to_ptr.vmem [resolvable:$true] %s322_s15 }
  0x67   : > { %s329_s28 = sand.u32 1, %s1526_s10   ;;  %s311_s2 = scalar_lea.sflag [#allocation4], %s310_s22 }
  0x68   : > { %p1354_p11 = pneg %p1746_p10 }
  0x6a   : > { %s1739_s14 = scalar_lea.hbm %s2200_s0, %s1152_s11  ;;  %s1357_s4 = scalar_lea.hbm %s2200_s0, 256 }
  0x6b   : > { %s1352_s3 = scalar_lea.hbm %s1739_s14, 128  ;;  %p1358_p13 = scmp.lt.u32.totalorder %s1739_s14, %s2200_s0 }
  0x6c   : > { %s1753_s27 = scalar_lea.hbm %s2202_s1, %s1152_s11  ;;  %p1353_p8 = scmp.ne.s32.totalorder %s1739_s14, %s1352_s3 }
  0x6d   : > { %p1359_p0 = scmp.lt.u32.totalorder %s1357_s4, %s1352_s3  ;;  %p1361_p5 = scmp.lt.u32.totalorder %s1352_s3, %s1739_s14 }
  0x6e   : > { %p1355_p12 = pnand %p1354_p11, %p1353_p8 }
  0x6f   : > { %p1360_p2 = por %p1359_p0, %p1358_p13 }
  0x70   : > { %p1356_p4 = pneg %p1355_p12 }
  0x71   : > { %p1362_p1 = por %p1361_p5, %p1360_p2 }
  0x73   : > { %p1363_p9 = pnand %p1362_p1, %p1356_p4 }
  0x75   : > { %1366 = shalt.err (!%p1363_p9)
}
  0x76   : > { %s1367_s22 = scalar_lea.vmem %s1742_s15, 128  ;;  %s1534_s11 = smov [#allocation3]  }
  0x77   : > { %p1368_p8 = scmp.ne.s32.totalorder %s1742_s15, %s1367_s22  ;;  %s1372_s18 = sshll.u32 %s1534_s11, 4  ;;  %s1373_s18 = int_to_ptr.vmem [resolvable:$false] %s1372_s18 }
  0x78   : > { %s1374_s5 = scalar_lea.vmem %s1373_s18, 256  ;;  %p1375_p6 = scmp.lt.s32.totalorder %s1742_s15, %s1373_s18 }
  0x79   : > { %p1370_p12 = pnand %p1368_p8, %p1354_p11  ;;  %p1376_p13 = scmp.lt.s32.totalorder %s1374_s5, %s1367_s22 }
  0x7b   : > { %p1371_p7 = pneg %p1370_p12  ;;  %p1377_p0 = por %p1376_p13, %p1375_p6 }
  0x7d   : > { %p1378_p2 = pnand %p1377_p0, %p1371_p7 }
  0x7f   : > { %1381 = shalt.err (!%p1378_p2)
}
  0x80   : > { %1211 = dma.hbm_to_vmem [thread:$0]  (!%p1746_p10), %s1739_s14, 128, %s1742_s15, %s311_s2  }
  0x81   : > { %s333_s3 = scalar_lea.vmem [#allocation7], %s1733_s26  ;;  %s330_s21 = scalar_lea.sflag [#allocation8], %s329_s28 }
  0x82   : > { %s340_s4 = sshll.u32 %s333_s3, 4  ;;  %s1382_s16 = scalar_lea.hbm %s1753_s27, 128  ;;  %s341_s4 = int_to_ptr.vmem [resolvable:$true] %s340_s4 }
  0x83   : > { %p1383_p1 = scmp.ne.s32.totalorder %s1753_s27, %s1382_s16  ;;  %s1387_s11 = scalar_lea.hbm %s2202_s1, 256 }
  0x84   : > { %p1388_p9 = scmp.lt.u32.totalorder %s1753_s27, %s2202_s1  ;;  %p1389_p4 = scmp.lt.u32.totalorder %s1387_s11, %s1382_s16 }
  0x85   : > { %p1385_p6 = pnand %p1383_p1, %p1354_p11  ;;  %p1391_p8 = scmp.lt.u32.totalorder %s1382_s16, %s1753_s27 }
  0x86   : > { %p1390_p5 = por %p1389_p4, %p1388_p9 }
  0x87   : > { %p1386_p7 = pneg %p1385_p6 }
  0x88   : > { %p1392_p12 = por %p1391_p8, %p1390_p5 }
  0x8a   : > { %p1393_p13 = pnand %p1392_p12, %p1386_p7 }
  0x8c   : > { %1396 = shalt.err (!%p1393_p13)
}
  0x8d   : > { %s1397_s2 = scalar_lea.vmem %s341_s4, 128  ;;  %s1535_s26 = smov [#allocation7]  }
  0x8e   : > { %p1398_p0 = scmp.ne.s32.totalorder %s341_s4, %s1397_s2  ;;  %s1402_s14 = sshll.u32 %s1535_s26, 4  ;;  %s1403_s14 = int_to_ptr.vmem [resolvable:$false] %s1402_s14 }
  0x8f   : > { %s1404_s15 = scalar_lea.vmem %s1403_s14, 256  ;;  %p1405_p6 = scmp.lt.s32.totalorder %s341_s4, %s1403_s14 }
  0x90   : > { %p1400_p2 = pnand %p1398_p0, %p1354_p11  ;;  %p1406_p3 = scmp.lt.s32.totalorder %s1404_s15, %s1397_s2 }
  0x92   : > { %p1401_p1 = pneg %p1400_p2  ;;  %p1407_p4 = por %p1406_p3, %p1405_p6 }
  0x94   : > { %p1408_p9 = pnand %p1407_p4, %p1401_p1 }
  0x96   : > { %1411 = shalt.err (!%p1408_p9)
}
  0x97   : > { %1214 = dma.hbm_to_vmem [thread:$0]  (!%p1746_p10), %s1753_s27, 128, %s341_s4, %s330_s21  }
  0x98   : > { %p2203_p7 = scmp.ne.s32.totalorder %s2187_s13, 0 }
  0x99   : > { %s1806_s28 = sand.u32 (!%p2203_p7), 1, %s1518_s30   ;;  %p2204_p3 = scmp.ne.s32.totalorder (!%p2203_p7), %s2197_s23, 0 }
  0x9a   : > { %349 = sbr.rel (%p2203_p7) target bundleno = 813 (0x32d), region = 48  ;;  %s1809_s3 = sshll.u32 (!%p2203_p7), %s1806_s28, 3 }
  0x9b   : > { %s352_s16 = scalar_lea.sflag (!%p2203_p7), [#allocation4], %s1806_s28 }
  0xa1   : > { %1485 = dma.done.wait (%p2204_p3), %s352_s16, 128  }
  0xa2   : > { %1487 = vsyncadd (%p2204_p3), %s352_s16, 4294967168  ;;  %s360_s13 = sand.u32 1, %s1609_s12   ;;  %s364_s27 = scalar_lea.vmem [#allocation7], %s1809_s3 }
  0xa3   : > { %s361_s20 = scalar_lea.sflag [#allocation8], %s360_s13 }
  0xa4   : > { %1489 = dma.done.wait (%p2204_p3), %s361_s20, 128  }
  0xa5   : > { %1491 = vsyncadd (%p2204_p3), %s361_s20, 4294967168  ;;  %p2205_p10 = scmp.eq.s32.totalorder %s1609_s12, 0 }
  0xa7   : > { %1493 = dma.done.wait (%p2205_p10), [#allocation8], 2048   ;;  %p2206_p11 = pmov %p2205_p10 }
  0xa8   : > { %p2207_p5 = pmov %p2205_p10 }
  0xa9   : > { %1495 = vsyncadd (%p2206_p11), [#allocation8], 4294965248 }
  0xaa   : > { %1497 = dma.done.wait (%p2207_p5), [#allocation6], 32   ;;  %p2208_p8 = pmov %p2207_p5 }
  0xab   : > { %p2209_p12 = pmov %p2207_p5 }
  0xac   : > { %1499 = vsyncadd (%p2208_p8), [#allocation6], 4294967264 }
  0xad   : > { %1501 = dma.done.wait (%p2209_p12), [#allocation12], 48   ;;  %p2210_p13 = pmov %p2207_p5 }
  0xaf   : > { %1503 = vsyncadd (%p2210_p13), [#allocation12], 4294967248 }
  0xb0   : > { %385 = sfence }
  0xb1   : > { %v427_v0 = vld [vmem:[#allocation9 + $0x8] sm:$0xff]  ;;  %v429_v1 = vld [vmem:[#allocation9 + $0x18] sm:$0xff]  ;;  %v426_v2 = vld [vmem:[#allocation9] sm:$0xff]  ;;  %v1536_v7 = vmov 0.0   ;;  %vm442_vm0 = vcmask 523264   ;;  %s1837_s23 = sld [smem:[#allocation11]]  ;;  %v609_v26 = vlaneseq }
  0xb2   : > { %v1155_v3 = vpack.c.bf16 %v429_v1, %v427_v0  ;;  %v428_v4 = vld [vmem:[#allocation9 + $0x10] sm:$0xff]  ;;  %v431_v5 = vld [vmem:[#allocation9 + $0x28] sm:$0xff]  ;;  %v433_v6 = vld [vmem:[#allocation9 + $0x38] sm:$0xff]  ;;  %510 = vmatprep.mubr.f32.mxu0 %v1536_v7  ;;  %s1839_s4 = sld [smem:[#allocation11 + $0x1]]  ;;  %s1841_s21 = sld [smem:[#allocation11 + $0x2]]  ;;  %vm839_vm1 = vcmask 1040384  }
  0xb3   : > { %v1157_v8 = vpack.c.bf16 %v428_v4, %v426_v2  ;;  %v1159_v9 = vpack.c.bf16 %v433_v6, %v431_v5  ;;  %v430_v10 = vld [vmem:[#allocation9 + $0x20] sm:$0xff]  ;;  %v432_v11 = vld [vmem:[#allocation9 + $0x30] sm:$0xff]  ;;  %v435_v12 = vld [vmem:[#allocation9 + $0x48] sm:$0xff]  ;;  %s1843_s22 = sld [smem:[#allocation11 + $0x3]]  ;;  %s1845_s11 = sld [smem:[#allocation11 + $0x4]]  ;;  %v1876_v29 = vshrl.u32 %v609_v26, 7 }
  0xb4   : > { %1156 = vmatprep.subr.bf16.mxu0 %v1155_v3  ;;  %v437_v13 = vld [vmem:[#allocation9 + $0x58] sm:$0xff]  ;;  %v1161_v14 = vpack.c.bf16 %v432_v11, %v430_v10  ;;  %v434_v16 = vld [vmem:[#allocation9 + $0x40] sm:$0xff]  ;;  %v436_v17 = vld [vmem:[#allocation9 + $0x50] sm:$0xff]  ;;  %s1847_s18 = sld [smem:[#allocation11 + $0x5]]  ;;  %s1849_s5 = sld [smem:[#allocation11 + $0x6]]  ;;  %vm879_vm2 = vcmp.lt.s32.totalorder %v609_v26, 256 }
  0xb5   : > { %1158 = vmatpush1.bf16.msra.mxu0 %v1157_v8  ;;  %v1163_v15 = vpack.c.bf16 %v437_v13, %v435_v12  ;;  %v439_v18 = vld [vmem:[#allocation9 + $0x68] sm:$0xff]  ;;  %v441_v19 = vld [vmem:[#allocation9 + $0x78] sm:$0xff]  ;;  %v1165_v20 = vpack.c.bf16 %v436_v17, %v434_v16  ;;  %v438_v22 = vld [vmem:[#allocation9 + $0x60] sm:$0xff]  ;;  %s1851_s2 = sld [smem:[#allocation11 + $0x7]]  ;;  %s1853_s26 = sld [smem:[#allocation10]]  ;;  %v1907_v43 = vsub.s32 0, %v1876_v29 }
  0xb6   : > { %1160 = vmatprep.subr.bf16.mxu0 %v1159_v9  ;;  %v1167_v21 = vpack.c.bf16 %v441_v19, %v439_v18  ;;  %v440_v23 = vld [vmem:[#allocation9 + $0x70] sm:$0xff]  ;;  %s1855_s14 = sld [smem:[#allocation10 + $0x1]]  ;;  %s1857_s15 = sld [smem:[#allocation11 + $0x80]]  ;;  %v615_v44 = vsub.s32 4, %v1876_v29  ;;  %v627_v47 = vsub.s32 1, %v1876_v29  ;;  %v631_v48 = vsub.s32 5, %v1876_v29 }
  0xb7   : > { %v1169_v24 = vpack.c.bf16 %v440_v23, %v438_v22  ;;  %v425_v25 = vld [vmem:[%s364_s27] sm:$0xff]  ;;  %s1859_s16 = sld [smem:[#allocation10 + $0x2]]  ;;  %s1861_s13 = sld [smem:[#allocation10 + $0x3]]  ;;  %v518_v27 = vstv %s1837_s23  ;;  %v643_v49 = vsub.s32 2, %v1876_v29  ;;  %v647_v51 = vsub.s32 6, %v1876_v29 }
  0xb8   : > { %s1863_s20 = sld [smem:[#allocation10 + $0x80]]  ;;  %s1865_s27 = sld [smem:[#allocation11 + $0x81]]  ;;  %v522_v28 = vstv %s1839_s4  ;;  %v534_v31 = vstv %s1841_s21  ;;  %v659_v53 = vsub.s32 3, %v1876_v29  ;;  %v663_v54 = vsub.s32 7, %v1876_v29 }
  0xb9   : > { %1162 = vmatpush1.bf16.msra.mxu0 %v1161_v14  ;;  %s1867_s17 = sld [smem:[#allocation11 + $0x82]]  ;;  %s1869_s0 = sld [smem:[#allocation11 + $0x83]]  ;;  %v546_v32 = vstv %s1843_s22  ;;  %v558_v34 = vstv %s1845_s11 }
  0xba   : > { %1164 = vmatprep.subr.bf16.mxu0 %v1163_v15  ;;  %s1871_s1 = sld [smem:[#allocation11 + $0x84]]  ;;  %s1878_s19 = sld [smem:[#allocation11 + $0x85]]  ;;  %v570_v35 = vstv %s1847_s18  ;;  %v582_v36 = vstv %s1849_s5 }
  0xbb   : > { %s1880_s9 = sld [smem:[#allocation11 + $0x86]]  ;;  %s2211_s30 = scalar_lea.vmem [#allocation3], %s1809_s3  ;;  %v606_v33 = vstv %s1853_s26  ;;  %v594_v38 = vstv %s1851_s2 }
  0xbc   : > { %v1884_v30 = vld [vmem:[%s2211_s30] sm:$0xff]  ;;  %s1889_s6 = sld [smem:[#allocation11 + $0x87]]  ;;  %v622_v37 = vstv %s1855_s14  ;;  %v676_v41 = vstv %s1857_s15  ;;  %s1899_s23 = sld [smem:[#allocation10 + $0x81]] }
  0xbd   : > { %1166 = vmatpush1.bf16.msra.mxu0 %v1165_v20  ;;  %v638_v39 = vstv %s1859_s16  ;;  %v654_v40 = vstv %s1861_s13  ;;  %s1901_s30 = sld [smem:[#allocation10 + $0x82]]  ;;  %v1904_v42 = vmul.f32 %v606_v33, %v1884_v30  ;;  %v623_v46 = vmul.f32 %v622_v37, %v1884_v30  ;;  %s416_s4 = scalar_lea.vmem [#allocation14], %s1809_s3 }
  0xbe   : > { %1168 = vmatprep.subr.bf16.mxu0 %v1167_v21  ;;  %v764_v45 = vstv %s1863_s20  ;;  %v639_v50 = vmul.f32 %v638_v39, %v1884_v30  ;;  %v655_v52 = vmul.f32 %v654_v40, %v1884_v30  ;;  %v680_v55 = vstv %s1865_s27  ;;  %s920_s21 = sshll.u32 %s416_s4, 4  ;;  %s1154_s22 = sshll.u32 %s1609_s12, 5  ;;  %s2091_s21 = int_to_ptr.vmem [resolvable:$true] %s920_s21 }
  0xbf   : > { %v692_v56 = vstv %s1867_s17  ;;  %v1923_v57 = vmul.f32 %v764_v45, %v1884_v30  ;;  %v704_v58 = vstv %s1869_s0  ;;  %v612_v62 = vrot.slane %v1904_v42, %v1907_v43  ;;  %s2018_s0 = sld [smem:[#allocation10 + $0x83]]  ;;  %s1153_s17 = sshll.u32 %s1609_s12, 7 }
  0xc0   : > { %v716_v59 = vstv %s1871_s1  ;;  %v728_v60 = vstv %s1878_s19  ;;  %v1934_v63 = vrot.slane %v1904_v42, %v615_v44  ;;  %v1938_v0 = vrot.slane %v623_v46, %v627_v47  ;;  %s671_s1 = sld [smem:[#allocation13]]  ;;  %s1119_s19 = sshll.u32 %s1806_s28, 1 }
  0xc1   : > { %1170 = vmatpush1.bf16.msra.mxu0 %v1169_v24  ;;  %v740_v61 = vstv %s1880_s9  ;;  %v1943_v2 = vrot.slane %v623_v46, %v631_v48  ;;  %v1947_v3 = vrot.slane %v639_v50, %v643_v49  ;;  %v1951_v4 = vrot.slane %v639_v50, %v647_v51  ;;  %s1143_s9 = sld [smem:[#allocation13 + $0x1]]  ;;  %s423_s11 = scalar_lea.vmem [#allocation15], %s1119_s19 }
  0xc2   : > { %v752_v1 = vstv %s1889_s6  ;;  %v1955_v5 = vrot.slane %v655_v52, %v659_v53  ;;  %v1961_v7 = vrot.slane %v655_v52, %v663_v54  ;;  %v770_v8 = vrot.slane %v1923_v57, %v1907_v43  ;;  %s835_s6 = sld [smem:[#allocation2]]  ;;  %s934_s18 = sshll.u32 %s423_s11, 4  ;;  %s2098_s18 = int_to_ptr.vmem [resolvable:$true] %s934_s18 }
  0xc3   : > { %v780_v9 = vstv %s1899_s23  ;;  %v796_v10 = vstv %s1901_s30  ;;  %s2088_s26 = scalar_lea.hbm %s2169_s7, %s1153_s17  ;;  %s2096_s12 = scalar_lea.hbm %s2170_s8, %s1154_s22 }
  0xc4   : > { %1120 = vmatmul.mubr.msk.f32.vlgmr.msra.gmra.mrb[0].mxu0 %vm442_vm0, %v425_v25  ;;  %s901_s15 = scalar_lea.sflag [#allocation5], %s1806_s28  ;;  %s1412_s16 = scalar_lea.vmem %s2091_s21, 128 }
  0xc5   : > { %p1413_p0 = scmp.ne.s32.totalorder %s2091_s21, %s1412_s16  ;;  %p2212_p2 = scmp.ne.s32.totalorder %s2198_s24, 0 }
  0xc6   : > { %s1538_s13 = smov [#allocation14]  }
  0xc7   : > { %p1414_p1 = pnand %p1413_p0, %p2212_p2  ;;  %s1416_s20 = sshll.u32 %s1538_s13, 4  ;;  %s1417_s20 = int_to_ptr.vmem [resolvable:$false] %s1416_s20 }
  0xc8   : > { %s1418_s27 = scalar_lea.vmem %s1417_s20, 256  ;;  %p1419_p4 = scmp.lt.s32.totalorder %s2091_s21, %s1417_s20 }
  0xc9   : > { %p1415_p6 = pneg %p1414_p1  ;;  %p1420_p9 = scmp.lt.s32.totalorder %s1418_s27, %s1412_s16 }
  0xcb   : > { %p1421_p7 = por %p1420_p9, %p1419_p4 }
  0xcd   : > { %p1422_p3 = pnand %p1421_p7, %p1415_p6 }
 0x197   : > { %v1957_v6 = vpop.f32.mrb[0].mxu0 }
 0x198   : > { %v1967_v11 = vpop.f32.mrb[1].mxu0  ;;  %v519_v12 = vmul.f32 %v518_v27, %v1957_v6  ;;  %v523_v13 = vmul.f32 %v522_v28, %v1957_v6  ;;  %v535_v14 = vmul.f32 %v534_v31, %v1957_v6  ;;  %v547_v15 = vmul.f32 %v546_v32, %v1957_v6 }
 0x199   : > { %v520_v16 = vmul.f32 %v518_v27, %v1967_v11  ;;  %v524_v17 = vmul.f32 %v522_v28, %v1967_v11  ;;  %v536_v18 = vmul.f32 %v534_v31, %v1967_v11  ;;  %v548_v19 = vmul.f32 %v546_v32, %v1967_v11 }
 0x19a   : > { %v527_v20 = vrot.slane %v523_v13, 1  ;;  %v539_v21 = vrot.slane %v535_v14, 2  ;;  %v551_v22 = vrot.slane %v547_v15, 3  ;;  %v559_v23 = vmul.f32 %v558_v34, %v1957_v6 }
 0x19b   : > { %v528_v24 = vrot.slane %v524_v17, 1  ;;  %v540_v25 = vrot.slane %v536_v18, 2  ;;  %v552_v33 = vrot.slane %v548_v19, 3  ;;  %v560_v37 = vmul.f32 %v558_v34, %v1967_v11 }
 0x19c   : > { %v531_v27 = vadd.f32 %v527_v20, %v519_v12  ;;  %v563_v28 = vrot.slane %v559_v23, 4  ;;  %v571_v31 = vmul.f32 %v570_v35, %v1957_v6  ;;  %v572_v32 = vmul.f32 %v570_v35, %v1967_v11 }
 0x19d   : > { %v532_v39 = vadd.f32 %v528_v24, %v520_v16  ;;  %v564_v40 = vrot.slane %v560_v37, 4  ;;  %v583_v45 = vmul.f32 %v582_v36, %v1957_v6  ;;  %v584_v46 = vmul.f32 %v582_v36, %v1967_v11 }
 0x19e   : > { %v543_v50 = vadd.f32 %v539_v21, %v531_v27  ;;  %v575_v52 = vrot.slane %v571_v31, 5  ;;  %v576_v34 = vrot.slane %v572_v32, 5  ;;  %v595_v12 = vmul.f32 %v594_v38, %v1957_v6 }
 0x19f   : > { %v544_v13 = vadd.f32 %v540_v25, %v532_v39  ;;  %v587_v14 = vrot.slane %v583_v45, 6  ;;  %v588_v15 = vrot.slane %v584_v46, 6  ;;  %v596_v35 = vmul.f32 %v594_v38, %v1967_v11 }
 0x1a0   : > { %v555_v16 = vadd.f32 %v551_v22, %v543_v50  ;;  %v599_v17 = vrot.slane %v595_v12, 7  ;;  %v677_v18 = vmul.f32 %v676_v41, %v1957_v6  ;;  %v678_v36 = vmul.f32 %v676_v41, %v1967_v11 }
 0x1a1   : > { %v556_v19 = vadd.f32 %v552_v33, %v544_v13  ;;  %v600_v20 = vrot.slane %v596_v35, 7  ;;  %v681_v21 = vmul.f32 %v680_v55, %v1957_v6  ;;  %v682_v23 = vmul.f32 %v680_v55, %v1967_v11 }
 0x1a2   : > { %v567_v24 = vadd.f32 %v563_v28, %v555_v16  ;;  %v693_v25 = vmul.f32 %v692_v56, %v1957_v6  ;;  %v694_v38 = vmul.f32 %v692_v56, %v1967_v11  ;;  %v705_v22 = vmul.f32 %v704_v58, %v1957_v6 }
 0x1a3   : > { %v568_v37 = vadd.f32 %v564_v40, %v556_v19  ;;  %v685_v27 = vrot.slane %v681_v21, 1  ;;  %v686_v41 = vrot.slane %v682_v23, 1  ;;  %v706_v33 = vmul.f32 %v704_v58, %v1967_v11 }
 0x1a4   : > { %v579_v31 = vadd.f32 %v575_v52, %v567_v24  ;;  %v697_v55 = vrot.slane %v693_v25, 2  ;;  %v698_v28 = vrot.slane %v694_v38, 2  ;;  %v709_v32 = vrot.slane %v705_v22, 3 }
 0x1a5   : > { %v580_v39 = vadd.f32 %v576_v34, %v568_v37  ;;  %v689_v45 = vadd.f32 %v685_v27, %v677_v18  ;;  %v690_v46 = vadd.f32 %v686_v41, %v678_v36  ;;  %v710_v56 = vrot.slane %v706_v33, 3 }
 0x1a6   : > { %v591_v50 = vadd.f32 %v587_v14, %v579_v31  ;;  %v717_v12 = vmul.f32 %v716_v59, %v1957_v6  ;;  %v718_v40 = vmul.f32 %v716_v59, %v1967_v11  ;;  %v729_v58 = vmul.f32 %v728_v60, %v1957_v6 }
 0x1a7   : > { %v592_v52 = vadd.f32 %v588_v15, %v580_v39  ;;  %v701_v34 = vadd.f32 %v697_v55, %v689_v45  ;;  %v702_v13 = vadd.f32 %v698_v28, %v690_v46  ;;  %v730_v14 = vmul.f32 %v728_v60, %v1967_v11 }
 0x1a8   : > { %v603_v35 = vadd.f32 %v599_v17, %v591_v50  ;;  %v721_v16 = vrot.slane %v717_v12, 4  ;;  %v722_v18 = vrot.slane %v718_v40, 4  ;;  %v733_v36 = vrot.slane %v729_v58, 5 }
 0x1a9   : > { %v604_v59 = vadd.f32 %v600_v20, %v592_v52  ;;  %v713_v19 = vadd.f32 %v709_v32, %v701_v34  ;;  %v714_v21 = vadd.f32 %v710_v56, %v702_v13  ;;  %v734_v23 = vrot.slane %v730_v14, 5 }
 0x1aa   : > { %v619_v24 = vadd.f32 %v612_v62, %v603_v35  ;;  %v741_v15 = vmul.f32 %v740_v61, %v1957_v6  ;;  %v742_v60 = vmul.f32 %v740_v61, %v1967_v11  ;;  %v753_v17 = vmul.f32 %v752_v1, %v1957_v6 }
 0x1ab   : > { %v620_v20 = vadd.f32 %v1934_v63, %v604_v59  ;;  %v725_v25 = vadd.f32 %v721_v16, %v713_v19  ;;  %v726_v38 = vadd.f32 %v722_v18, %v714_v21  ;;  %v754_v22 = vmul.f32 %v752_v1, %v1967_v11 }
 0x1ac   : > { %v635_v42 = vadd.f32 %v1938_v0, %v619_v24  ;;  %v745_v62 = vrot.slane %v741_v15, 6  ;;  %v774_v37 = vrot.slane %v1923_v57, %v615_v44  ;;  %v781_v61 = vmul.f32 %v780_v9, %v1884_v30 }
 0x1ad   : > { %v636_v6 = vadd.f32 %v1943_v2, %v620_v20  ;;  %v737_v27 = vadd.f32 %v733_v36, %v725_v25  ;;  %v738_v41 = vadd.f32 %v734_v23, %v726_v38  ;;  %v746_v63 = vrot.slane %v742_v60, 6 }
 0x1ae   : > { %v757_v33 = vrot.slane %v753_v17, 7  ;;  %v758_v31 = vrot.slane %v754_v22, 7  ;;  %v797_v1 = vmul.f32 %v796_v10, %v1884_v30  ;;  %v812_v11 = vstv %s2018_s0 }
 0x1af   : > { %v651_v0 = vadd.f32 %v1947_v3, %v635_v42  ;;  %v652_v55 = vadd.f32 %v1951_v4, %v636_v6  ;;  %v749_v28 = vadd.f32 %v745_v62, %v737_v27  ;;  %v750_v44 = vadd.f32 %v746_v63, %v738_v41 }
 0x1b0   : > { %v786_v9 = vrot.slane %v781_v61, %v627_v47  ;;  %v790_v39 = vrot.slane %v781_v61, %v631_v48  ;;  %v813_v45 = vmul.f32 %v812_v11, %v1884_v30  ;;  %v802_v10 = vrot.slane %v797_v1, %v643_v49 }
 0x1b1   : > { %v761_v2 = vadd.f32 %v757_v33, %v749_v28  ;;  %v762_v32 = vadd.f32 %v758_v31, %v750_v44  ;;  %v806_v3 = vrot.slane %v797_v1, %v647_v51  ;;  %v667_v4 = vadd.f32 %v1955_v5, %v651_v0 }
 0x1b2   : > { %v668_v46 = vadd.f32 %v1961_v7, %v652_v55  ;;  %v818_v12 = vrot.slane %v813_v45, %v659_v53  ;;  %v822_v49 = vrot.slane %v813_v45, %v663_v54  ;;  %v672_v52 = vstv %s671_s1 }
 0x1b3   : > { %v777_v47 = vadd.f32 %v770_v8, %v761_v2  ;;  %v778_v56 = vadd.f32 %v774_v37, %v762_v32  ;;  %v669_v51 = vmax.f32 %v667_v4, 0.0  ;;  %v830_v13 = vstv %s1143_s9 }
 0x1b4   : > { %v670_v40 = vmax.f32 %v668_v46, 0.0  ;;  %v836_v36 = vstv %s835_s6  ;;  %v1537_v6 = vmov 1966171168   ;;  %v891_v1 = vcombine.high %v1884_v30, %v1884_v30 }
 0x1b5   : > { %v793_v50 = vadd.f32 %v786_v9, %v777_v47  ;;  %v794_v48 = vadd.f32 %v790_v39, %v778_v56  ;;  %v673_v57 = vmul.f32 %v672_v52, %v669_v51  ;;  %v863_v27 = vunpack.c.l.s4 %v1537_v6 }
 0x1b6   : > { %v674_v8 = vmul.f32 %v672_v52, %v670_v40 }
 0x1b7   : > { %v809_v58 = vadd.f32 %v802_v10, %v793_v50  ;;  %v810_v5 = vadd.f32 %v806_v3, %v794_v48  ;;  %v864_v41 = vunpack.c.0.s8 %v863_v27 }
 0x1b9   : > { %v825_v7 = vadd.f32 %v818_v12, %v809_v58  ;;  %v826_v34 = vadd.f32 %v822_v49, %v810_v5  ;;  %v867_v11 = vsub.s32 %v864_v41, %v1876_v29 }
 0x1bb   : > { %v827_v14 = vmax.f32 %v825_v7, 0.0  ;;  %v828_v35 = vmax.f32 %v826_v34, 0.0 }
 0x1bd   : > { %v831_v16 = vmul.f32 %v830_v13, %v827_v14  ;;  %v832_v18 = vmul.f32 %v830_v13, %v828_v35 }
 0x1bf   : > { %v833_v53 = vadd.f32 %v831_v16, %v673_v57  ;;  %v834_v59 = vadd.f32 %v832_v18, %v674_v8 }
 0x1c1   : > { %v837_v54 = vadd.f32 %v836_v36, %v833_v53  ;;  %v838_v19 = vadd.f32 %v836_v36, %v834_v59 }
 0x1c3   : > { %v840_v21 = vsel %vm839_vm1, %v837_v54, -inf  ;;  %v841_v23 = vsel %vm839_vm1, %v838_v19, -inf }
 0x1c4   : > { %v842_v24 = vmax.f32 %v840_v21, %v841_v23 }
 0x1c6   : > { %843 = vmax.xlane.f32.xlu0 %v842_v24 }
 0x253   : > { %v844_v15 = vpop.xlane.xlu0 %843 }
 0x254   : > { %v845_v60 = vsub.f32 %v837_v54, %v844_v15  ;;  %v846_v17 = vsub.f32 %v838_v19, %v844_v15 }
 0x256   : > { %v847_v20 = vmul.f32 1.442695, %v845_v60  ;;  %v849_v25 = vmul.f32 1.442695, %v846_v17 }
 0x258   : > { %1273 = vpow2.f32 %v847_v20 }
 0x259   : > { %1275 = vpow2.f32 %v849_v25 }
 0x262   : > { %v1274_v38 = vpop.eup %1273 }
 0x263   : > { %v1276_v22 = vpop.eup %1275  ;;  %v851_v42 = vsel %vm839_vm1, %v1274_v38, 0.0 }
 0x264   : > { %v852_v62 = vsel %vm839_vm1, %v1276_v22, 0.0 }
 0x265   : > { %v853_v37 = vadd.f32 %v852_v62, %v851_v42 }
 0x267   : > { %854 = vadd.xlane.f32.xlu0 %v853_v37 }
 0x2f4   : > { %v855_v61 = vpop.xlane.xlu0 %854 }
 0x2f5   : > { %1277 = vrcp.f32 %v855_v61 }
 0x2ff   : > { %v1278_v63 = vpop.eup %1277 }
 0x300   : > { %v857_v33 = vmul.f32 %v1278_v63, %v1274_v38  ;;  %v858_v31 = vmul.f32 %v1278_v63, %v1276_v22 }
 0x302   : > { %v885_v0 = vrot.slane %v857_v33, %v1907_v43  ;;  %v889_v55 = vrot.slane %v858_v31, %v1907_v43  ;;  %v861_v28 = vcombine.low %v857_v33, %v858_v31 }
 0x304   : > { %v893_v44 = vmul.f32 %v885_v0, %v1884_v30  ;;  %v894_v9 = vmul.f32 %v891_v1, %v889_v55  ;;  %v868_v2 = vrot.slane %v861_v28, %v867_v11 }
 0x306   : > { %v897_v29 = vcombine.low %v893_v44, %v894_v9  ;;  %v875_v30 = vrot.slane %v868_v2, %v867_v11 }
 0x308   : > { %899 = vst [vmem:[%s416_s4] sm:$0xff] %v897_v29  ;;  %881 = vst.msk [vmem:[%s423_s11] sm:$0x3] %vm879_vm2, %v875_v30 }
 0x309   : > { %1425 = shalt.err (!%p1422_p3)
}
 0x30a   : > { %s1426_s23 = scalar_lea.hbm %s2088_s26, 128  ;;  %s1430_s1 = scalar_lea.hbm %s2169_s7, 256 }
 0x30b   : > { %p1427_p10 = scmp.ne.s32.totalorder %s2088_s26, %s1426_s23  ;;  %p1431_p8 = scmp.lt.u32.totalorder %s2088_s26, %s2169_s7 }
 0x30c   : > { %p1432_p12 = scmp.lt.u32.totalorder %s1430_s1, %s1426_s23  ;;  %p1434_p0 = scmp.lt.u32.totalorder %s1426_s23, %s2088_s26 }
 0x30d   : > { %p1428_p11 = pnand %p1427_p10, %p2212_p2 }
 0x30e   : > { %p1433_p13 = por %p1432_p12, %p1431_p8 }
 0x30f   : > { %p1429_p5 = pneg %p1428_p11 }
 0x310   : > { %p1435_p1 = por %p1434_p0, %p1433_p13 }
 0x312   : > { %p1436_p6 = pnand %p1435_p1, %p1429_p5 }
 0x314   : > { %1439 = shalt.err (!%p1436_p6)
}
 0x315   : > { %1191 = dma.vmem_to_hbm [thread:$0]  (%p2212_p2), %s2091_s21, 128, %s2088_s26, %s901_s15  }
 0x316   : > { %s906_s19 = scalar_lea.sflag [#allocation16], %s1806_s28  ;;  %s1440_s17 = scalar_lea.vmem %s2098_s18, 32 }
 0x317   : > { %p1441_p4 = scmp.ne.s32.totalorder %s2098_s18, %s1440_s17  ;;  %s1539_s4 = smov [#allocation15]  }
 0x318   : > { %s1444_s22 = sshll.u32 %s1539_s4, 4  ;;  %s1445_s22 = int_to_ptr.vmem [resolvable:$false] %s1444_s22 }
 0x319   : > { %p1442_p9 = pnand %p1441_p4, %p2212_p2  ;;  %s1446_s11 = scalar_lea.vmem %s1445_s22, 64 }
 0x31a   : > { %p1447_p3 = scmp.lt.s32.totalorder %s2098_s18, %s1445_s22  ;;  %p1448_p10 = scmp.lt.s32.totalorder %s1446_s11, %s1440_s17 }
 0x31b   : > { %p1443_p7 = pneg %p1442_p9 }
 0x31c   : > { %p1449_p11 = por %p1448_p10, %p1447_p3 }
 0x31e   : > { %p1450_p5 = pnand %p1449_p11, %p1443_p7 }
 0x320   : > { %1453 = shalt.err (!%p1450_p5)
}
 0x321   : > { %s1454_s28 = scalar_lea.hbm %s2096_s12, 32  ;;  %s1458_s2 = scalar_lea.hbm %s2170_s8, 64 }
 0x322   : > { %p1455_p8 = scmp.ne.s32.totalorder %s2096_s12, %s1454_s28  ;;  %p1459_p0 = scmp.lt.u32.totalorder %s2096_s12, %s2170_s8 }
 0x323   : > { %p1460_p1 = scmp.lt.u32.totalorder %s1458_s2, %s1454_s28  ;;  %p1462_p4 = scmp.lt.u32.totalorder %s1454_s28, %s2096_s12 }
 0x324   : > { %p1456_p12 = pnand %p1455_p8, %p2212_p2 }
 0x325   : > { %p1461_p6 = por %p1460_p1, %p1459_p0 }
 0x326   : > { %p1457_p13 = pneg %p1456_p12 }
 0x327   : > { %p1463_p9 = por %p1462_p4, %p1461_p6 }
 0x329   : > { %p1464_p7 = pnand %p1463_p9, %p1457_p13 }
 0x32b   : > { %1467 = shalt.err (!%p1464_p7)
}
 0x32c   : > { %1192 = dma.vmem_to_hbm [thread:$0]  (%p2212_p2), %s2098_s18, 32, %s2096_s12, %s906_s19  }
 0x32d PF: > { %s946_s14 = sand.u32 1, %s1514_s29   ;;  %p2213_p3 = scmp.ne.s32.totalorder %s2199_s25, 0 }
 0x32e   : > { %p2214_p10 = scmp.ge.s32.totalorder %s1526_s10, 2  ;;  %s947_s15 = scalar_lea.sflag [#allocation5], %s946_s14 }
 0x330   : > { %p1216_p11 = pnand %p2214_p10, %p2213_p3 }
 0x332   : > { %1505 = dma.done.wait (!%p1216_p11), %s947_s15, 128  }
 0x333   : > { %1507 = vsyncadd (!%p1216_p11), %s947_s15, 4294967168  ;;  %s956_s16 = scalar_lea.sflag [#allocation16], %s946_s14 }
 0x334   : > { %1509 = dma.done.wait (!%p1216_p11), %s956_s16, 32  }
 0x335   : > { %1511 = vsyncadd (!%p1216_p11), %s956_s16, 4294967264  ;;  %s2215_s10 = sld [smem:[#allocation26_spill]]  ;;  %s2216_s29 = sld [smem:[#allocation24_spill]] }
 0x336   : > { %s2217_s30 = sld [smem:[#allocation25_spill]]  ;;  %s2218_s9 = sld [smem:[#allocation27_spill]] }
 0x33b   : > { %p31_p2 = scmp.ge.s32.totalorder %s2215_s10, 4  }
 0x33d   :  { %33 = sbr.rel (!%p31_p2) target bundleno = 19 (0x13), region = 140 }
 0x344   :  { %961 = vsyncpa [#allocation4], 1 }
 0x345   :  { %963 = vsyncpa [#allocation4 + $0x1], 1 }
 0x346   :  { %964 = vsyncpa [#allocation8], 1 }
 0x347   :  { %966 = vsyncpa [#allocation8 + $0x1], 1 }
 0x348   :  { %967 = vsyncpa [#allocation5], 1 }
 0x349   :  { %969 = vsyncpa [#allocation5 + $0x1], 1 }
 0x34a   :  { %970 = vsyncpa [#allocation16], 1 }
 0x34b   :  { %972 = vsyncpa [#allocation16 + $0x1], 1 }
 0x34c   :  { %973 = vsyncpa [#allocation6], 1 }
 0x34d   :  { %975 = vsyncpa [#allocation6 + $0x1], 1 }
 0x34e   :  { %976 = vsyncpa [#allocation12], 1 }

</bundles_post_ra>
